<compile_context>
chip_gen: v5e
topology: v5e:2x2
jax: 0.10.0
libtpu: 0.0.40
codegen_flags: <defaults>
</compile_context>

<pallas_src>
import math
import functools

import jax
import jax.numpy as jnp
import numpy as np
from jax.experimental import pallas as pl
from jax.experimental.pallas import tpu as pltpu


_LANE = 128
# Per-grid-step moved-bytes budget.  Double-buffered VMEM footprint is ~2x
# this, i.e. ~8 MiB: fits every chip (v5e 16->32 MiB raised scoped limit,
# v6e 32 MiB, v7x 32 MiB scoped / 64 MiB physical) and sits in the measured
# 1-4 MiB-per-step HBM-roofline sweet spot.
_STEP_BYTE_BUDGET = 4 * 1024 * 1024


def _gfp_kernel(x_ref, w_ref, o_ref, *, C, Bt, T):
    # x_ref: (Bt, C, T)   w_ref: (1, T)   o_ref: (Bt, 2*C, T)   all f32, T % 128 == 0.
    two_pi = jnp.float32(2.0 * math.pi)
    w2pi = w_ref[...].astype(jnp.float32) * two_pi            # (1, T), folded once
    t = x_ref[...].astype(jnp.float32) * w2pi[None, :, :]     # (Bt, C, T)

    # sin for output channels [0, C): one vectorized slab over all input channels.
    o_ref[:, 0:C, :] = jnp.sin(t)

    # cos of the LAST input channel only -> output channel C (overwrite quirk),
    # reusing the already-formed product (no reload of x, no extra multiply).
    o_ref[:, C:C + 1, :] = jnp.cos(t[:, C - 1:C, :])

    # Output channels (C, 2*C) are zero: pure splat store, no input read, no EUP work.
    if C > 1:
        o_ref[:, C + 1:2 * C, :] = jnp.zeros((Bt, C - 1, T), jnp.float32)


def _choose_tiles(B, C, HW_pad):
    """Pick (Bt, TILE_HW) so each grid step moves ~_STEP_BYTE_BUDGET bytes."""
    bytes_per_row_per_lane = (3 * C + 1) * 4          # C in + 2C out + w, f32
    per_row_full = bytes_per_row_per_lane * HW_pad

    if per_row_full <= _STEP_BYTE_BUDGET:
        # Whole spatial extent per step; fold batch rows up to the budget.
        cap = max(1, _STEP_BYTE_BUDGET // per_row_full)
        bt = 1
        for d in range(1, B + 1):                     # largest divisor of B <= cap
            if B % d == 0 and d <= cap:
                bt = d
        return bt, HW_pad

    # Spatial tiling: largest multiple-of-128 divisor of HW_pad within budget.
    m = HW_pad // _LANE
    cap_lanes = max(1, _STEP_BYTE_BUDGET // (bytes_per_row_per_lane * _LANE))
    best = 1
    for d in range(1, m + 1):
        if m % d == 0 and d <= cap_lanes:
            best = d
    return 1, best * _LANE


def gaussian_fourier_projection(x, w):
    """x: [B, C, H, W] float32, w: [H, W] float32 -> [B, 2*C, H, W] float32."""
    B, C, H, W = x.shape
    HW = H * W
    HW_pad = ((HW + _LANE - 1) // _LANE) * _LANE      # lane-dense, unmasked stores

    x_flat = jnp.reshape(x, (B, C, HW))               # H*W on the 128-lane axis
    w_flat = jnp.reshape(w, (1, HW))
    if HW_pad != HW:
        x_flat = jnp.pad(x_flat, ((0, 0), (0, 0), (0, HW_pad - HW)))
        w_flat = jnp.pad(w_flat, ((0, 0), (0, HW_pad - HW)))

    Bt, T = _choose_tiles(B, C, HW_pad)
    grid = (B // Bt, HW_pad // T)
    kernel = functools.partial(_gfp_kernel, C=C, Bt=Bt, T=T)

    out_flat = pl.pallas_call(
        kernel,
        out_shape=jax.ShapeDtypeStruct((B, 2 * C, HW_pad), jnp.float32),
        grid_spec=pltpu.PrefetchScalarGridSpec(
            num_scalar_prefetch=0,
            grid=grid,
            in_specs=[
                pl.BlockSpec((Bt, C, T), lambda b, s: (b, 0, s)),
                pl.BlockSpec((1, T), lambda b, s: (0, s)),
            ],
            out_specs=pl.BlockSpec((Bt, 2 * C, T), lambda b, s: (b, 0, s)),
        ),
        compiler_params=pltpu.CompilerParams(
            dimension_semantics=("parallel", "parallel"),
            vmem_limit_bytes=32 * 1024 * 1024,
        ),
    )(x_flat, w_flat)

    if HW_pad != HW:
        out_flat = out_flat[:, :, :HW]
    return jnp.reshape(out_flat, (B, 2 * C, H, W))


def _reference(x, w):
    """Float64 reproduction of the (quirky) PyTorch forward."""
    x = np.asarray(x, dtype=np.float64)
    w = np.asarray(w, dtype=np.float64)
    B, C, H, W = x.shape
    out = np.zeros((B, 2 * C, H, W), dtype=np.float64)
    for i in range(B):
        for j in range(C):
            tmp = x[i, j] * w * 2.0 * np.pi
            out[i, j] = np.sin(tmp)
            out[i, j + 1] = np.cos(tmp)
    return out


if __name__ == "__main__":
    B, C, H, W = 2, 4, 16, 16
    key = jax.random.PRNGKey(0)
    kx, kw = jax.random.split(key)
    x = jax.random.normal(kx, (B, C, H, W), dtype=jnp.float32)
    # Deterministic parameter init, matching torch.randn(H, W) * scale.
    scale = 30.0
    w = jax.random.normal(kw, (H, W), dtype=jnp.float32) * scale

    out = gaussian_fourier_projection(x, w)
    out = jax.block_until_ready(out)

    ref = _reference(np.asarray(x), np.asarray(w))
    # f32 large-argument trig: |x*w*2pi| reaches several hundred, so the f32
    # range-reduction error ~|arg|*eps_f32 dominates.  Derive the tolerance
    # from the actual max argument instead of a fixed 1e-5.
    max_arg = float(np.max(np.abs(
        np.asarray(x, np.float64) * np.asarray(w, np.float64)[None, None] * 2.0 * np.pi)))
    atol = max(1e-4, 8.0 * max_arg * float(np.finfo(np.float32).eps))
    np.testing.assert_allclose(np.asarray(out), ref, atol=atol, rtol=0.0)
    print("KERNEL_OK")
</pallas_src>

<mosaic_0001>
module attributes {stable_mosaic.version = 11 : i64} {
  func.func @_gfp_kernel(%arg0: i32, %arg1: i32, %arg2: memref<2x4x256xf32, #tpu.memory_space<vmem>>, %arg3: memref<1x256xf32, #tpu.memory_space<vmem>>, %arg4: memref<2x8x256xf32, #tpu.memory_space<vmem>>) attributes {dimension_semantics = [#tpu.dimension_semantics<parallel>, #tpu.dimension_semantics<parallel>], iteration_bounds = array<i64: 1, 1>, scalar_prefetch = 0 : i64, scratch_operands = 0 : i64, tpu.core_type = #tpu.core_type<tc>, window_params = [{transform_indices = @transform_0, window_bounds = array<i64: 2, 4, 256>}, {transform_indices = @transform_1, window_bounds = array<i64: 1, 256>}, {transform_indices = @transform_2, window_bounds = array<i64: 2, 8, 256>}]} {
    %c0 = arith.constant 0 : index
    %c0_0 = arith.constant 0 : index
    %0 = vector.load %arg3[%c0, %c0_0] : memref<1x256xf32, #tpu.memory_space<vmem>>, vector<1x256xf32>
    %cst = arith.constant 6.28318548 : f32
    %1 = vector.broadcast %cst : f32 to vector<1x256xf32>
    %2 = arith.mulf %0, %1 : vector<1x256xf32>
    %c0_1 = arith.constant 0 : index
    %c0_2 = arith.constant 0 : index
    %c0_3 = arith.constant 0 : index
    %3 = vector.load %arg2[%c0_1, %c0_2, %c0_3] : memref<2x4x256xf32, #tpu.memory_space<vmem>>, vector<2x4x256xf32>
    %4 = vector.shape_cast %2 : vector<1x256xf32> to vector<1x1x256xf32>
    %5 = vector.broadcast %4 : vector<1x1x256xf32> to vector<2x4x256xf32>
    %6 = arith.mulf %3, %5 : vector<2x4x256xf32>
    %7 = math.sin %6 : vector<2x4x256xf32>
    %c0_4 = arith.constant 0 : index
    %c0_5 = arith.constant 0 : index
    %c0_6 = arith.constant 0 : index
    %8 = vector.load %arg4[%c0_4, %c0_5, %c0_6] : memref<2x8x256xf32, #tpu.memory_space<vmem>>, vector<2x4x256xf32>
    tpu.vector_store %arg4[%c0_4, %c0_5, %c0_6], %7 {strides = array<i32>} : memref<2x8x256xf32, #tpu.memory_space<vmem>>, vector<2x4x256xf32>,
    %9 = vector.extract_strided_slice %6 {offsets = [0, 3, 0], sizes = [2, 1, 256], strides = [1, 1, 1]} : vector<2x4x256xf32> to vector<2x1x256xf32>
    %10 = math.cos %9 : vector<2x1x256xf32>
    %c0_7 = arith.constant 0 : index
    %c4 = arith.constant 4 : index
    %c0_8 = arith.constant 0 : index
    %11 = vector.load %arg4[%c0_7, %c4, %c0_8] : memref<2x8x256xf32, #tpu.memory_space<vmem>>, vector<2x1x256xf32>
    tpu.vector_store %arg4[%c0_7, %c4, %c0_8], %10 {strides = array<i32>} : memref<2x8x256xf32, #tpu.memory_space<vmem>>, vector<2x1x256xf32>,
    %cst_9 = arith.constant 0.000000e+00 : f32
    %12 = vector.broadcast %cst_9 : f32 to vector<2x3x256xf32>
    %c0_10 = arith.constant 0 : index
    %c5 = arith.constant 5 : index
    %c0_11 = arith.constant 0 : index
    %13 = vector.load %arg4[%c0_10, %c5, %c0_11] : memref<2x8x256xf32, #tpu.memory_space<vmem>>, vector<2x3x256xf32>
    tpu.vector_store %arg4[%c0_10, %c5, %c0_11], %12 {strides = array<i32>} : memref<2x8x256xf32, #tpu.memory_space<vmem>>, vector<2x3x256xf32>,
    return
  }
  func.func @transform_0(%arg0: i32, %arg1: i32) -> (i32, i32, i32) {
    %c0_i32 = arith.constant 0 : i32
    %c0_i32_0 = arith.constant 0 : i32
    return %arg0, %c0_i32, %arg1 : i32, i32, i32
  }
  func.func @transform_1(%arg0: i32, %arg1: i32) -> (i32, i32) {
    %c0_i32 = arith.constant 0 : i32
    %c0_i32_0 = arith.constant 0 : i32
    return %c0_i32, %arg1 : i32, i32
  }
  func.func @transform_2(%arg0: i32, %arg1: i32) -> (i32, i32, i32) {
    %c0_i32 = arith.constant 0 : i32
    %c0_i32_0 = arith.constant 0 : i32
    return %arg0, %c0_i32, %arg1 : i32, i32, i32
  }
}

</mosaic_0001>

<bundles_post_ra>
// kernel: tpu_custom_call.1
= control target key start
LH: loop header
LB: loop body
LE: loop exit
PB: predicated region body
PF: predicated region fallthrough
CT: control target
= control target key end

     0   :  { %7 = vsyncpa [#allocation3], 0  ;;  %s1047_s0 = inlined_call_operand.hbm [shape: f32[2,4,256], index: 0, kind: input, shape index: {}]   ;;  %s1048_s1 = inlined_call_operand.hbm [shape: f32[1,256], index: 1, kind: input, shape index: {}]   ;;  %s1049_s2 = inlined_call_operand.hbm [shape: f32[2,8,256], index: 2, kind: output, shape index: {}]  }
   0x1   :  { %8 = vsyncpa [#allocation6], 0 }
   0x2   :  { %9 = vsyncpa [#allocation4], 0  ;;  %s14_s11 = sshll.u32 %s1047_s0, 4  ;;  %s839_s12 = smov [#allocation2]   ;;  %s15_s11 = int_to_ptr.hbm [resolvable:$true] %s14_s11 }
   0x3   :  { %s16_s13 = sshll.u32 %s839_s12, 4  ;;  %s28_s16 = sshll.u32 %s1048_s1, 4  ;;  %s17_s13 = int_to_ptr.vmem [resolvable:$true] %s16_s13  ;;  %s29_s16 = int_to_ptr.hbm [resolvable:$true] %s28_s16 }
   0x4   :  { %s840_s17 = smov 128   ;;  %s841_s18 = smov 8  }
   0x5   :  { %22 = dma.hbm_to_vmem [thread:$0]  %s15_s11, 256, %s17_s13, [#allocation3], %s840_s17, %s840_s17, %s841_s18  }
   0x6   :  { %s842_s19 = smov [#allocation5]  }
   0x7   :  { %s30_s20 = sshll.u32 %s842_s19, 4  ;;  %s31_s20 = int_to_ptr.vmem [resolvable:$true] %s30_s20 }
   0x8   :  { %33 = dma.hbm_to_vmem [thread:$0]  %s29_s16, 32, %s31_s20, [#allocation6]  }
   0x9   :  { %833 = dma.done.wait [#allocation3], 256  }
   0xa   :  { %834 = vsyncadd [#allocation3], 4294967040 }
   0xb   :  { %835 = dma.done.wait [#allocation6], 32  }
   0xc   :  { %836 = vsyncadd [#allocation6], 4294967264  ;;  %v42_v0 = vld [vmem:[#allocation5] sm:$0x3]  ;;  %vm50_vm0 = vcmask 1043456   ;;  %v44_v4 = vld [vmem:[#allocation2] sm:$0xff] }
   0xd   :  { %v43_v1 = vmul.f32 6.2831855, %v42_v0  ;;  %v45_v6 = vld [vmem:[#allocation2 + $0x8] sm:$0xff]  ;;  %v843_v31 = vmov 683565275   ;;  %s851_s0 = smov [#allocation7]  }
   0xe   :  { %v844_v33 = vmov 2475754826   ;;  %v845_v35 = vmov 2131351028   ;;  %v846_v37 = vmov 2102212464  }
   0xf   :  { %v47_v2 = vperm.slane %v43_v1, 0  ;;  %v48_v3 = vperm.slane %v43_v1, 1  ;;  %v847_v39 = vmov 920167782   ;;  %v848_v48 = vmov 1326507024  }
  0x10   :  { %s718_s1 = sshll.u32 %s851_s0, 4  ;;  %s720_s23 = sshll.u32 %s1049_s2, 4  ;;  %s719_s1 = int_to_ptr.vmem [resolvable:$true] %s718_s1  ;;  %s721_s23 = int_to_ptr.hbm [resolvable:$true] %s720_s23 }
  0x11   :  { %v49_v5 = vrot.slane %v48_v3, 4  ;;  %s852_s24 = smov 256   ;;  %s853_s25 = smov 16  }
  0x13   :  { %v51_v7 = vsel %vm50_vm0, %v47_v2, %v49_v5 }
  0x14   :  { %v875_v8 = vmul.f32 %v51_v7, %v44_v4  ;;  %v877_v9 = vmul.f32 %v51_v7, %v45_v6 }
  0x16   :  { %v55_v10 = vand.u32 2147483647, %v875_v8  ;;  %v58_v11 = vand.u32 2139095040, %v875_v8  ;;  %v210_v12 = vand.u32 2147483647, %v877_v9  ;;  %v213_v13 = vand.u32 2139095040, %v877_v9 }
  0x18   :  { %v59_v14 = vshrl.u32 %v58_v11, 23  ;;  %v62_v15 = vand.u32 8388607, %v55_v10  ;;  %v214_v16 = vshrl.u32 %v213_v13, 23  ;;  %v217_v20 = vand.u32 8388607, %v210_v12 }
  0x1a   :  { %v734_v17 = vadd.s32 4294967169, %v59_v14  ;;  %v63_v18 = vor.u32 8388608, %v62_v15  ;;  %v737_v19 = vadd.s32 4294967169, %v214_v16  ;;  %v218_v25 = vor.u32 8388608, %v217_v20 }
  0x1c   :  { %v65_v21 = vadd.s32 1, %v734_v17  ;;  %v220_v22 = vadd.s32 1, %v737_v19  ;;  %v887_v24 = vshll.u32 %v63_v18, 8  ;;  %v897_v42 = vshll.u32 %v218_v25, 8 }
  0x1e   :  { %vm66_vm1 = vcmp.gt.s32.totalorder %v65_v21, 0  ;;  %vm221_vm2 = vcmp.gt.s32.totalorder %v220_v22, 0  ;;  %v104_v41 = vand.u32 65535, %v887_v24  ;;  %v105_v46 = vshrl.u32 %v887_v24, 16 }
  0x1f   :  { %v67_v23 = vsel %vm66_vm1, %v65_v21, 0  ;;  %v222_v27 = vsel %vm221_vm2, %v220_v22, 0 }
  0x20   :  { %v69_v26 = vand.u32 31, %v67_v23  ;;  %v889_v28 = vshrl.u32 %v67_v23, 5  ;;  %v891_v29 = vand.u32 31, %v222_v27  ;;  %v915_v59 = vshrl.u32 %v222_v27, 5 }
  0x22   :  { %v70_v30 = vsub.s32 32, %v69_v26  ;;  %v72_v32 = vshll.u32 %v843_v31, %v69_v26  ;;  %v75_v34 = vshll.u32 %v844_v33, %v69_v26  ;;  %v78_v36 = vshll.u32 %v845_v35, %v69_v26 }
  0x23   :  { %v81_v38 = vshll.u32 %v846_v37, %v69_v26  ;;  %v84_v40 = vshll.u32 %v847_v39, %v69_v26  ;;  %vm87_vm3 = vcmp.lt.s32.totalorder %v889_v28, 1  ;;  %vm90_vm4 = vcmp.lt.s32.totalorder %v889_v28, 4 }
  0x24   :  { %v73_v43 = vshrl.u32 %v844_v33, %v70_v30  ;;  %v76_v44 = vshrl.u32 %v845_v35, %v70_v30  ;;  %v79_v45 = vshrl.u32 %v846_v37, %v70_v30  ;;  %v82_v47 = vshrl.u32 %v847_v39, %v70_v30 }
  0x25   :  { %v85_v49 = vshrl.u32 %v848_v48, %v70_v30  ;;  %v906_v53 = vsub.s32 32, %v891_v29  ;;  %v71_v54 = vshrl.u32 %v843_v31, %v70_v30  ;;  %vm89_vm5 = vcmp.lt.s32.totalorder %v889_v28, 3 }
  0x26   :  { %v74_v50 = vor.u32 %v73_v43, %v72_v32  ;;  %v77_v51 = vor.u32 %v76_v44, %v75_v34  ;;  %v80_v52 = vor.u32 %v79_v45, %v78_v36  ;;  %v83_v55 = vor.u32 %v82_v47, %v81_v38 }
  0x27   :  { %v86_v56 = vor.u32 %v85_v49, %v84_v40  ;;  %vm88_vm6 = vcmp.lt.s32.totalorder %v889_v28, 2  ;;  %v227_v62 = vshll.u32 %v843_v31, %v891_v29  ;;  %v230_v63 = vshll.u32 %v844_v33, %v891_v29 }
  0x28   :  { %v95_v57 = vsel %vm87_vm3, %v74_v50, %v77_v51  ;;  %v99_v58 = vsel %vm87_vm3, %v77_v51, %v80_v52  ;;  %v96_v60 = vsel %vm90_vm4, %v83_v55, 920167782  ;;  %v92_v0 = vsel %vm90_vm4, %v80_v52, 2102212464 }
  0x29   :  { %v100_v61 = vsel %vm90_vm4, %v86_v56, 1326507024  ;;  %v97_v1 = vsel %vm89_vm5, %v80_v52, %v96_v60  ;;  %v228_v3 = vshrl.u32 %v844_v33, %v906_v53  ;;  %v91_v4 = vsel %vm87_vm3, %v71_v54, %v74_v50 }
  0x2a   :  { %v101_v2 = vsel %vm89_vm5, %v83_v55, %v100_v61  ;;  %v98_v5 = vsel %vm88_vm6, %v95_v57, %v97_v1  ;;  %v231_v7 = vshrl.u32 %v845_v35, %v906_v53  ;;  %v93_v16 = vsel %vm89_vm5, %v77_v51, %v92_v0 }
  0x2b   :  { %v102_v6 = vsel %vm88_vm6, %v99_v58, %v101_v2  ;;  %v128_v14 = vand.u32 65535, %v98_v5  ;;  %v129_v15 = vshrl.u32 %v98_v5, 16  ;;  %v940_v17 = vor.u32 %v228_v3, %v227_v62 }
  0x2c   :  { %v106_v11 = vand.u32 65535, %v102_v6  ;;  %v107_v13 = vshrl.u32 %v102_v6, 16  ;;  %v942_v18 = vor.u32 %v231_v7, %v230_v63  ;;  %v233_v19 = vshll.u32 %v845_v35, %v891_v29 }
  0x2d   :  { %v234_v23 = vshrl.u32 %v846_v37, %v906_v53  ;;  %v130_v26 = vmul.u32 %v128_v14, %v104_v41  ;;  %v131_v27 = vmul.u32 %v129_v15, %v104_v41  ;;  %v132_v30 = vmul.u32 %v128_v14, %v105_v46 }
  0x2e   :  { %v108_v20 = vmul.u32 %v106_v11, %v104_v41  ;;  %v109_v21 = vmul.u32 %v107_v13, %v104_v41  ;;  %v110_v22 = vmul.u32 %v106_v11, %v105_v46  ;;  %v111_v25 = vmul.u32 %v107_v13, %v105_v46 }
  0x2f   :  { %v133_v36 = vmul.u32 %v129_v15, %v105_v46  ;;  %v134_v40 = vshll.u32 %v131_v27, 16  ;;  %v135_v43 = vshrl.u32 %v131_v27, 16  ;;  %v136_v44 = vshll.u32 %v132_v30, 16 }
  0x30   :  { %v112_v32 = vshll.u32 %v109_v21, 16  ;;  %v113_v33 = vshrl.u32 %v109_v21, 16  ;;  %v114_v34 = vshll.u32 %v110_v22, 16  ;;  %v115_v38 = vshrl.u32 %v110_v22, 16 }
  0x31   :  { %v137_v45 = vshrl.u32 %v132_v30, 16  ;;  %v236_v47 = vshll.u32 %v846_v37, %v891_v29  ;;  %v849_v49 = vmov 0   ;;  %vm138_vm8 = vc.u32 %v130_v26, %v134_v40 }
  0x32   :  { %vm116_vm7 = vc.u32 %v108_v20, %v112_v32  ;;  %v118_v35 = vadd.s32 %v112_v32, %v108_v20  ;;  %v140_v41 = vadd.s32 %v134_v40, %v130_v26  ;;  %v237_v51 = vshrl.u32 %v847_v39, %v906_v53 }
  0x33   :  { %v117_v50 = vsel %vm116_vm7, 1, %v849_v49  ;;  %v139_v46 = vsel %vm138_vm8, 1, %v849_v49  ;;  %v239_v54 = vshll.u32 %v847_v39, %v891_v29  ;;  %v235_v37 = vor.u32 %v234_v23, %v233_v19 }
  0x34   :  { %v119_v52 = vadd.s32 %v117_v50, %v111_v25  ;;  %vm120_vm9 = vc.u32 %v118_v35, %v114_v34  ;;  %v141_v56 = vadd.s32 %v139_v46, %v133_v36  ;;  %vm142_vm10 = vc.u32 %v140_v41, %v136_v44 }
  0x35   :  { %v121_v55 = vsel %vm120_vm9, 1, %v849_v49  ;;  %v143_v58 = vsel %vm142_vm10, 1, %v849_v49  ;;  %v238_v60 = vor.u32 %v237_v51, %v236_v47  ;;  %v240_v61 = vshrl.u32 %v848_v48, %v906_v53 }
  0x36   :  { %v123_v57 = vadd.s32 %v121_v55, %v119_v52  ;;  %v959_v62 = vadd.s32 %v140_v41, %v136_v44  ;;  %v145_v63 = vadd.s32 %v143_v58, %v141_v56  ;;  %vm242_vm11 = vcmp.lt.s32.totalorder %v915_v59, 1 }
  0x37   :  { %vm244_vm12 = vcmp.lt.s32.totalorder %v915_v59, 3  ;;  %v241_v39 = vor.u32 %v240_v61, %v239_v54  ;;  %vm243_vm13 = vcmp.lt.s32.totalorder %v915_v59, 2  ;;  %vm245_vm14 = vcmp.lt.s32.totalorder %v915_v59, 4 }
  0x38   :  { %v124_v29 = vadd.s32 %v123_v57, %v113_v33  ;;  %v94_v0 = vsel %vm88_vm6, %v91_v4, %v93_v16  ;;  %v146_v1 = vadd.s32 %v145_v63, %v135_v43  ;;  %v250_v48 = vsel %vm242_vm11, %v940_v17, %v942_v18 }
  0x39   :  { %v251_v2 = vsel %vm245_vm14, %v238_v60, 920167782  ;;  %v254_v6 = vsel %vm242_vm11, %v942_v18, %v235_v37  ;;  %v260_v28 = vshrl.u32 %v897_v42, 16  ;;  %v255_v11 = vsel %vm245_vm14, %v241_v39, 1326507024 }
  0x3a   :  { %v973_v3 = vadd.s32 %v124_v29, %v115_v38  ;;  %v252_v5 = vsel %vm244_vm12, %v235_v37, %v251_v2  ;;  %v147_v4 = vadd.s32 %v146_v1, %v137_v45  ;;  %v259_v13 = vand.u32 65535, %v897_v42 }
  0x3b   :  { %v253_v7 = vsel %vm243_vm13, %v250_v48, %v252_v5  ;;  %v148_v14 = vmul.u32 %v887_v24, %v94_v0  ;;  %v256_v15 = vsel %vm244_vm12, %v238_v60, %v255_v11  ;;  %v226_v47 = vshrl.u32 %v843_v31, %v906_v53 }
  0x3c   :  { %vm150_vm15 = vc.u32 %v973_v3, %v959_v62  ;;  %v283_v16 = vand.u32 65535, %v253_v7  ;;  %v151_v19 = vadd.s32 1, %v147_v4  ;;  %v257_v20 = vsel %vm243_vm13, %v254_v6, %v256_v15 }
  0x3d   :  { %v284_v21 = vshrl.u32 %v253_v7, 16  ;;  %v261_v22 = vand.u32 65535, %v257_v20  ;;  %v262_v23 = vshrl.u32 %v257_v20, 16  ;;  %v247_v46 = vsel %vm245_vm14, %v235_v37, 2102212464 }
  0x3e   :  { %v287_v25 = vmul.u32 %v283_v16, %v260_v28  ;;  %v152_v26 = vsel %vm150_vm15, %v151_v19, %v147_v4  ;;  %v285_v27 = vmul.u32 %v283_v16, %v259_v13  ;;  %v246_v31 = vsel %vm242_vm11, %v226_v47, %v940_v17 }
  0x3f   :  { %v286_v30 = vmul.u32 %v284_v21, %v259_v13  ;;  %v153_v32 = vadd.s32 %v152_v26, %v148_v14  ;;  %v263_v24 = vmul.u32 %v261_v22, %v259_v13  ;;  %v264_v33 = vmul.u32 %v262_v23, %v259_v13 }
  0x40   :  { %v265_v34 = vmul.u32 %v261_v22, %v260_v28  ;;  %v288_v36 = vmul.u32 %v284_v21, %v260_v28  ;;  %v291_v40 = vshll.u32 %v287_v25, 16  ;;  %v266_v44 = vmul.u32 %v262_v23, %v260_v28 }
  0x41   :  { %v289_v38 = vshll.u32 %v286_v30, 16  ;;  %v154_v43 = vadd.s32 536870912, %v153_v32  ;;  %v267_v35 = vshll.u32 %v264_v33, 16  ;;  %v268_v57 = vshrl.u32 %v264_v33, 16 }
  0x42   :  { %v269_v45 = vshll.u32 %v265_v34, 16  ;;  %v290_v60 = vshrl.u32 %v286_v30, 16  ;;  %v248_v37 = vsel %vm244_vm12, %v942_v18, %v247_v46  ;;  %v270_v29 = vshrl.u32 %v265_v34, 16 }
  0x43   :  { %vm293_vm0 = vc.u32 %v285_v27, %v289_v38  ;;  %v295_v50 = vadd.s32 %v289_v38, %v285_v27  ;;  %v995_v41 = vshrl.u32 %v154_v43, 30  ;;  %vm271_vm1 = vc.u32 %v263_v24, %v267_v35 }
  0x44   :  { %v273_v51 = vadd.s32 %v267_v35, %v263_v24  ;;  %v294_v52 = vsel %vm293_vm0, 1, %v849_v49  ;;  %v272_v54 = vsel %vm271_vm1, 1, %v849_v49  ;;  %v292_v0 = vshrl.u32 %v287_v25, 16 }
  0x45   :  { %v296_v55 = vadd.s32 %v294_v52, %v288_v36  ;;  %vm297_vm2 = vc.u32 %v295_v50, %v291_v40  ;;  %v156_v56 = vshll.u32 %v995_v41, 30  ;;  %v274_v58 = vadd.s32 %v272_v54, %v266_v44 }
  0x46   :  { %vm275_vm3 = vc.u32 %v273_v51, %v269_v45  ;;  %v298_v61 = vsel %vm297_vm2, 1, %v849_v49  ;;  %v299_v5 = vadd.s32 %v295_v50, %v291_v40  ;;  %v249_v17 = vsel %vm243_vm13, %v246_v31, %v248_v37 }
  0x47   :  { %v276_v53 = vsel %vm275_vm3, 1, %v849_v49  ;;  %v157_v63 = vsub.s32 %v153_v32, %v156_v56  ;;  %v300_v1 = vadd.s32 %v298_v61, %v296_v55  ;;  %v303_v11 = vmul.u32 %v897_v42, %v249_v17 }
  0x48   :  { %v278_v39 = vadd.s32 %v276_v53, %v274_v58  ;;  %v149_v14 = vadd.s32 %v959_v62, %v973_v3  ;;  %v179_v36 = vsub.s32 4, %v995_v41  ;;  %vm57_vm8 = vcmp.lt.s32.totalorder %v875_v8, 0 }
  0x49   :  { %vm158_vm4 = vcmp.lt.s32.totalorder %v157_v63, 0  ;;  %v159_v48 = vsub.s32 0, %v157_v63  ;;  %v301_v6 = vadd.s32 %v300_v1, %v290_v60  ;;  %vm56_vm9 = vcmp.le.f32.partialorder %v55_v10, 0.7853982 }
  0x4a   :  { %v279_v2 = vadd.s32 %v278_v39, %v268_v57  ;;  %v180_v35 = vsel %vm57_vm8, %v179_v36, %v995_v41  ;;  %vm212_vm12 = vcmp.lt.s32.totalorder %v877_v9, 0  ;;  %vm211_vm14 = vcmp.le.f32.partialorder %v210_v12, 0.7853982 }
  0x4b   :  { %v160_v28 = vsel %vm158_vm4, %v159_v48, %v157_v63  ;;  %v302_v7 = vadd.s32 %v301_v6, %v292_v0  ;;  %v182_v52 = vsel %vm56_vm9, 0, %v180_v35  ;;  %vm198_vm0 = vweird.f32 %v875_v8 }
  0x4c   :  { %v280_v4 = vadd.s32 %v279_v2, %v270_v29  ;;  %v161_v49 = vclz %v160_v28  ;;  %v199_v60 = vadd.s32 3, %v182_v52 }
  0x4d   :  { %v306_v13 = vadd.s32 1, %v302_v7 }
  0x4e   :  { %vm305_vm5 = vc.u32 %v280_v4, %v299_v5  ;;  %v735_v18 = vadd.s32 4294967294, %v161_v49  ;;  %v304_v51 = vadd.s32 %v299_v5, %v280_v4  ;;  %v200_v1 = vand.u32 3, %v199_v60 }
  0x4f   :  { %v307_v15 = vsel %vm305_vm5, %v306_v13, %v302_v7  ;;  %v526_v13 = vand.u32 3, %v182_v52 }
  0x50   :  { %vm736_vm6 = vcmp.lt.s32.totalorder %v735_v18, 0  ;;  %v308_v19 = vadd.s32 %v307_v15, %v303_v11  ;;  %vm205_vm11 = vcmp.eq.s32.totalorder %v200_v1, 2  ;;  %vm202_vm13 = vcmp.eq.s32.totalorder %v200_v1, 0 }
  0x51   :  { %v164_v16 = vsel %vm736_vm6, 0, %v735_v18  ;;  %vm201_vm15 = vcmp.lt.s32.totalorder %v200_v1, 2  ;;  %vm528_vm1 = vcmp.eq.s32.totalorder %v526_v13, 0  ;;  %vm531_vm2 = vcmp.eq.s32.totalorder %v526_v13, 2 }
  0x52   :  { %v165_v20 = vsub.s32 32, %v164_v16  ;;  %v166_v59 = vshll.u32 %v157_v63, %v164_v16  ;;  %v169_v21 = vsub.s32 4294967266, %v164_v16  ;;  %v309_v22 = vadd.s32 536870912, %v308_v19 }
  0x53   :  { %vm527_vm3 = vcmp.lt.s32.totalorder %v526_v13, 2 }
  0x54   :  { %v167_v23 = vshrl.u32 %v149_v14, %v165_v20  ;;  %v170_v25 = vadd.s32 127, %v169_v21  ;;  %v1015_v26 = vshrl.u32 %v309_v22, 30  ;;  %v850_v22 = vmov 0.0  }
  0x55   :  { %710 = vst [vmem:[#allocation7] sm:$0xe0] %v850_v22 }
  0x56   :  { %v168_v27 = vor.u32 %v167_v23, %v166_v59  ;;  %v171_v42 = vshll.u32 %v170_v25, 23  ;;  %v311_v30 = vshll.u32 %v1015_v26, 30  ;;  %v334_v49 = vsub.s32 4, %v1015_v26  ;;  %711 = vst [vmem:[#allocation7 + $0x8] sm:$0xe0] %v850_v22 }
  0x57   :  { %712 = vst [vmem:[#allocation7 + $0x10] sm:$0xe0] %v850_v22 }
  0x58   :  { %v172_v32 = vor.u32 4788187, %v171_v42  ;;  %v175_v24 = vcvt.s32.f32 %v168_v27  ;;  %v312_v33 = vsub.s32 %v308_v19, %v311_v30  ;;  %v335_v19 = vsel %vm212_vm12, %v334_v49, %v1015_v26  ;;  %713 = vst [vmem:[#allocation7 + $0x18] sm:$0xe0] %v850_v22 }
  0x59   :  { %v337_v25 = vsel %vm211_vm14, 0, %v335_v19 }
  0x5a   :  { %v173_v62 = vand.u32 2147483647, %v172_v32  ;;  %vm313_vm7 = vcmp.lt.s32.totalorder %v312_v33, 0  ;;  %v314_v3 = vsub.s32 0, %v312_v33  ;;  %v680_v35 = vand.u32 3, %v337_v25 }
  0x5c   :  { %v176_v34 = vmul.f32 %v175_v24, %v173_v62  ;;  %v315_v38 = vsel %vm313_vm7, %v314_v3, %v312_v33  ;;  %v354_v24 = vadd.s32 3, %v337_v25  ;;  %vm685_vm5 = vcmp.eq.s32.totalorder %v680_v35, 2 }
  0x5d   :  { %v316_v43 = vclz %v315_v38 }
  0x5e   :  { %v177_v40 = vxor.u32 2147483648, %v176_v34  ;;  %v355_v38 = vand.u32 3, %v354_v24 }
  0x5f   :  { %v738_v45 = vadd.s32 4294967294, %v316_v43 }
  0x60   :  { %v178_v44 = vsel %vm57_vm8, %v177_v40, %v176_v34  ;;  %vm360_vm4 = vcmp.eq.s32.totalorder %v355_v38, 2  ;;  %vm356_vm6 = vcmp.lt.s32.totalorder %v355_v38, 2  ;;  %vm357_vm7 = vcmp.eq.s32.totalorder %v355_v38, 0 }
  0x61   :  { %v181_v47 = vsel %vm56_vm9, %v875_v8, %v178_v44  ;;  %vm739_vm10 = vcmp.lt.s32.totalorder %v738_v45, 0  ;;  %vm681_vm8 = vcmp.lt.s32.totalorder %v680_v35, 2  ;;  %vm682_vm9 = vcmp.eq.s32.totalorder %v680_v35, 0 }
  0x62   :  { %v183_v50 = vmul.f32 %v181_v47, %v181_v47  ;;  %v319_v46 = vsel %vm739_vm10, 0, %v738_v45 }
  0x63   :  { %v320_v56 = vsub.s32 32, %v319_v46  ;;  %v321_v57 = vshll.u32 %v312_v33, %v319_v46  ;;  %v324_v58 = vsub.s32 4294967266, %v319_v46 }
  0x64   :  { %v184_v54 = vmul.f32 -0.001358992, %v183_v50  ;;  %v191_v55 = vmul.f32 -0.00019511016, %v183_v50 }
  0x65   :  { %v322_v53 = vshrl.u32 %v304_v51, %v320_v56  ;;  %v325_v61 = vadd.s32 127, %v324_v58 }
  0x66   :  { %v185_v31 = vadd.f32 0.041655596, %v184_v54  ;;  %v192_v10 = vadd.f32 0.008332121, %v191_v55  ;;  %v700_v54 = vlaneseq }
  0x67   :  { %v323_v37 = vor.u32 %v322_v53, %v321_v57  ;;  %v326_v29 = vshll.u32 %v325_v61, 23 }
  0x68   :  { %v186_v63 = vmul.f32 %v185_v31, %v183_v50  ;;  %v193_v41 = vmul.f32 %v192_v10, %v183_v50  ;;  %vm1035_vm10 = vcmp.lt.s32.totalorder %v700_v54, 256 }
  0x69   :  { %v327_v48 = vor.u32 4788187, %v326_v29  ;;  %v330_v2 = vcvt.s32.f32 %v323_v37 }
  0x6a   :  { %v187_v39 = vadd.f32 -0.4999988, %v186_v63  ;;  %v194_v0 = vadd.f32 -0.16666654, %v193_v41 }
  0x6b   :  { %v328_v6 = vand.u32 2147483647, %v327_v48 }
  0x6c   :  { %v188_v5 = vmul.f32 %v187_v39, %v183_v50  ;;  %v195_v17 = vmul.f32 %v194_v0, %v183_v50 }
  0x6d   :  { %v331_v7 = vmul.f32 %v330_v2, %v328_v6 }
  0x6e   :  { %v189_v28 = vadd.f32 1.0, %v188_v5  ;;  %v196_v4 = vadd.f32 1.0, %v195_v17 }
  0x6f   :  { %v332_v14 = vxor.u32 2147483648, %v331_v7 }
  0x70   :  { %v197_v11 = vmul.f32 %v196_v4, %v181_v47  ;;  %v206_v18 = vxor.u32 2147483648, %v189_v28 }
  0x71   :  { %v333_v20 = vsel %vm212_vm12, %v332_v14, %v331_v7 }
  0x72   :  { %v203_v15 = vxor.u32 2147483648, %v197_v11  ;;  %v207_v16 = vsel %vm205_vm11, %v206_v18, %v197_v11  ;;  %v336_v21 = vsel %vm211_vm14, %v877_v9, %v333_v20  ;;  %v533_v42 = vsel %vm531_vm2, %v206_v18, %v197_v11 }
  0x73   :  { %v338_v27 = vmul.f32 %v336_v21, %v336_v21  ;;  %vm353_vm11 = vweird.f32 %v877_v9 }
  0x74   :  { %v204_v59 = vsel %vm202_vm13, %v189_v28, %v203_v15  ;;  %v530_v26 = vsel %vm528_vm1, %v189_v28, %v203_v15 }
  0x75   :  { %v208_v23 = vsel %vm201_vm15, %v204_v59, %v207_v16  ;;  %v339_v30 = vmul.f32 -0.001358992, %v338_v27  ;;  %v346_v32 = vmul.f32 -0.00019511016, %v338_v27  ;;  %v534_v3 = vsel %vm527_vm3, %v530_v26, %v533_v42 }
  0x76   :  { %v209_v12 = vsel %vm198_vm0, nan, %v208_v23  ;;  %v535_v40 = vsel %vm198_vm0, nan, %v534_v3 }
  0x77   :  { %367 = vst [vmem:[#allocation1] ss:$2 sm:$0xff] %v209_v12  ;;  %v340_v33 = vadd.f32 0.041655596, %v339_v30  ;;  %v347_v62 = vadd.f32 0.008332121, %v346_v32 }
  0x79   :  { %v341_v34 = vmul.f32 %v340_v33, %v338_v27  ;;  %v348_v36 = vmul.f32 %v347_v62, %v338_v27 }
  0x7b   :  { %v342_v43 = vadd.f32 -0.4999988, %v341_v34  ;;  %v349_v44 = vadd.f32 -0.16666654, %v348_v36 }
  0x7d   :  { %v343_v50 = vmul.f32 %v342_v43, %v338_v27  ;;  %v350_v51 = vmul.f32 %v349_v44, %v338_v27 }
  0x7e   :  { %v368_v45 = vld.sshfl [vmem:[#allocation1] sm:$0xff pattern:$0x75316420]  ;;  %v369_v47 = vld.sshfl [vmem:[#allocation1 + $0x8] sm:$0xff pattern:$0x75316420] }
  0x7f   :  { %378 = vst [vmem:[#allocation7] sm:$0xf] %v368_v45  ;;  %v344_v52 = vadd.f32 1.0, %v343_v50  ;;  %v351_v46 = vadd.f32 1.0, %v350_v51 }
  0x80   :  { %692 = vst [vmem:[#allocation1] sm:$0xff] %v535_v40 }
  0x81   :  { %379 = vst [vmem:[#allocation7 + $0x8] sm:$0xf] %v369_v47  ;;  %v352_v55 = vmul.f32 %v351_v46, %v336_v21  ;;  %v361_v56 = vxor.u32 2147483648, %v344_v52 }
  0x83   :  { %v358_v8 = vxor.u32 2147483648, %v352_v55  ;;  %v362_v57 = vsel %vm360_vm4, %v361_v56, %v352_v55  ;;  %v687_v58 = vsel %vm685_vm5, %v361_v56, %v352_v55 }
  0x85   :  { %v359_v10 = vsel %vm357_vm7, %v344_v52, %v358_v8  ;;  %v684_v53 = vsel %vm682_vm9, %v344_v52, %v358_v8 }
  0x86   :  { %v363_v61 = vsel %vm356_vm6, %v359_v10, %v362_v57  ;;  %v688_v63 = vsel %vm681_vm8, %v684_v53, %v687_v58 }
  0x87   :  { %v694_v60 = vld [vmem:[#allocation1 + $0x3] ss:$4 sm:$0xff]  ;;  %v364_v41 = vsel %vm353_vm11, nan, %v363_v61  ;;  %v689_v37 = vsel %vm353_vm11, nan, %v688_v63 }
  0x88   :  { %705 = vst.msk [vmem:[#allocation7 + $0x4] ss:$8 sm:$0x3] %vm1035_vm10, %v694_v60 }
  0x89   :  { %371 = vst [vmem:[#allocation1 + $0x10] ss:$2 sm:$0xff] %v364_v41 }
  0x8a   :  { %695 = vst [vmem:[#allocation1 + $0x20] sm:$0xff] %v689_v37 }
  0x90   :  { %v372_v29 = vld.sshfl [vmem:[#allocation1 + $0x10] sm:$0xff pattern:$0x75316420]  ;;  %v373_v9 = vld.sshfl [vmem:[#allocation1 + $0x18] sm:$0xff pattern:$0x75316420] }
  0x91   :  { %380 = vst [vmem:[#allocation7 + $0x10] sm:$0xf] %v372_v29  ;;  %v697_v39 = vld [vmem:[#allocation1 + $0x23] ss:$4 sm:$0xff] }
  0x92   :  { %381 = vst [vmem:[#allocation7 + $0x18] sm:$0xf] %v373_v9 }
  0x93   :  { %708 = vst.msk [vmem:[#allocation7 + $0x14] ss:$8 sm:$0x3] %vm1035_vm10, %v697_v39 }
  0x94   :  { %726 = dma.vmem_to_hbm [thread:$0]  %s719_s1, 512, %s721_s23, [#allocation4], %s852_s24, %s852_s24, %s853_s25  }
  0x95   :  { %837 = dma.done.wait [#allocation4], 512  }
  0x96   :  { %838 = vsyncadd [#allocation4], 4294966784 }
  0x97   :  { %731 = vsyncpa [#allocation3], 1 }
  0x98   :  { %732 = vsyncpa [#allocation6], 1 }
  0x99   :  { %733 = vsyncpa [#allocation4], 1 }

</bundles_post_ra>
